<compile_context>
chip_gen: v7x
topology: tpu7x:2x2x1
jax: 0.10.0
libtpu: 0.0.40
codegen_flags: <defaults>
</compile_context>

<pallas_src>
import jax
import jax.numpy as jnp
from jax.experimental import pallas as pl
from jax.experimental.pallas import tpu as pltpu


# ----------------------------------------------------------------------------
# Kernel bodies: issue all B gathers as concurrent HBM->HBM DMAs, then wait.
# The gather index comes from the scalar-prefetched `idx` ref in SMEM.
# ----------------------------------------------------------------------------
def _gather_dma_prefix_kernel(idx_ref, pool_ref, out_ref, sem):
    # pool_ref: (P, L, 2, length, hd) HBM (pool-index-major, contiguous slabs)
    # out_ref : (L, 2, B, length, hd) HBM (torch raw-gather layout)
    B = out_ref.shape[2]
    copies = []
    for b in range(B):  # static unroll; scalar SMEM reads happen before any wait
        cp = pltpu.make_async_copy(
            pool_ref.at[idx_ref[b]],        # contiguous (L, 2, length, hd) source
            out_ref.at[:, :, b],            # strided (L, 2, length, hd) destination
            sem.at[b],
        )
        cp.start()
        copies.append(cp)
    for cp in copies:
        cp.wait()


def _gather_dma_plain_kernel(idx_ref, pool_ref, out_ref, sem):
    # pool_ref: (P, L, 2*length, E) HBM (pool-index-major, contiguous slabs)
    # out_ref : (L, B, 2*length, E) HBM
    B = out_ref.shape[1]
    copies = []
    for b in range(B):
        cp = pltpu.make_async_copy(
            pool_ref.at[idx_ref[b]],        # contiguous (L, 2*length, E) source
            out_ref.at[:, b],               # strided (L, 2*length, E) destination
            sem.at[b],
        )
        cp.start()
        copies.append(cp)
    for cp in copies:
        cp.wait()


# ----------------------------------------------------------------------------
# Wrappers
# ----------------------------------------------------------------------------
def gather_prompts_prefix(pool_pm, idx):
    """pool_pm: (P, L, 2, length, hd) pool-index-major; idx: (B,) int32.
    Returns (L, 2, B, length, hd) == original pool[:, :, idx] with (H,Dh) flattened."""
    P, L, dual, length, hd = pool_pm.shape
    B = idx.shape[0]
    slab_bytes = L * dual * length * hd * jnp.dtype(pool_pm.dtype).itemsize
    return pl.pallas_call(
        _gather_dma_prefix_kernel,
        out_shape=jax.ShapeDtypeStruct((L, dual, B, length, hd), pool_pm.dtype),
        grid_spec=pltpu.PrefetchScalarGridSpec(
            num_scalar_prefetch=1,
            grid=(1,),  # single invocation; all B gathers in flight concurrently
            in_specs=[pl.BlockSpec(memory_space=pl.ANY)],
            out_specs=pl.BlockSpec(memory_space=pl.ANY),
            scratch_shapes=[pltpu.SemaphoreType.DMA((B,))],
        ),
        cost_estimate=pl.CostEstimate(
            flops=0, transcendentals=0, bytes_accessed=2 * B * slab_bytes
        ),
    )(idx, pool_pm)


def gather_prompts_plain(pool_pm, idx):
    """pool_pm: (P, L, 2*length, E) pool-index-major; idx: (B,) int32.
    Returns (L, B, 2*length, E) == original pool[:, idx]."""
    P, L, dl, E = pool_pm.shape
    B = idx.shape[0]
    slab_bytes = L * dl * E * jnp.dtype(pool_pm.dtype).itemsize
    return pl.pallas_call(
        _gather_dma_plain_kernel,
        out_shape=jax.ShapeDtypeStruct((L, B, dl, E), pool_pm.dtype),
        grid_spec=pltpu.PrefetchScalarGridSpec(
            num_scalar_prefetch=1,
            grid=(1,),
            in_specs=[pl.BlockSpec(memory_space=pl.ANY)],
            out_specs=pl.BlockSpec(memory_space=pl.ANY),
            scratch_shapes=[pltpu.SemaphoreType.DMA((B,))],
        ),
        cost_estimate=pl.CostEstimate(
            flops=0, transcendentals=0, bytes_accessed=2 * B * slab_bytes
        ),
    )(idx, pool_pm)


# ----------------------------------------------------------------------------
# JAX re-implementation of S_EPrompt (parameter setup + forward wrapper).
# ----------------------------------------------------------------------------
class SEPromptJAX:
    def __init__(
        self,
        key,
        length=5,
        embed_dim=768,
        prompt_init="uniform",
        prompt_pool=False,
        pool_size=None,
        num_layers=1,
        use_prefix_tune_for_e_prompt=False,
        num_heads=-1,
        same_key_value=False,
        dtype=jnp.float32,  # bf16 halves HBM traffic for this bandwidth-bound gather
    ):
        self.length = length
        self.embed_dim = embed_dim
        self.prompt_pool = prompt_pool
        self.pool_size = pool_size
        self.num_layers = num_layers
        self.use_prefix_tune_for_e_prompt = use_prefix_tune_for_e_prompt
        self.num_heads = num_heads
        self.same_key_value = same_key_value
        self.dtype = dtype

        def _init(k, shape):
            if prompt_init == "zero":
                return jnp.zeros(shape, dtype)
            # 'uniform' -> torch nn.init.uniform_(p, -1, 1)
            return jax.random.uniform(k, shape, dtype, minval=-1.0, maxval=1.0)

        if self.prompt_pool:
            if self.use_prefix_tune_for_e_prompt:
                assert embed_dim % self.num_heads == 0
                head_dim = embed_dim // self.num_heads
                if self.same_key_value:
                    shape = (num_layers, 1, pool_size, length, num_heads, head_dim)
                    p = _init(key, shape)
                    p = jnp.tile(p, (1, 2, 1, 1, 1, 1))
                else:
                    shape = (num_layers, 2, pool_size, length, num_heads, head_dim)
                    p = _init(key, shape)
                self.prompt = p  # torch layout: (L, 2, P, length, H, Dh)
                # One-time pre-permute to pool-index-major with (H, Dh) flattened:
                # each gathered slab becomes one contiguous HBM region per example.
                self._pool_pm = jnp.transpose(p, (2, 0, 1, 3, 4, 5)).reshape(
                    pool_size, num_layers, 2, length, num_heads * head_dim
                )
            else:
                shape = (num_layers, pool_size, length * 2, embed_dim)
                self.prompt = _init(key, shape)  # torch layout: (L, P, 2*length, E)
                self._pool_pm = jnp.transpose(self.prompt, (1, 0, 2, 3))
        # else: mirror torch -- no self.prompt is created; forward() is unusable.

    def forward(self, idx):
        out = {}
        if not self.prompt_pool:
            # torch original would AttributeError on self.prompt here.
            raise NotImplementedError("S_EPrompt forward requires prompt_pool=True")
        idx = jnp.asarray(idx, jnp.int32)
        # Guard against out-of-range indices becoming OOB input DMAs.
        # TODO(synk): torch would raise on OOB indices; we clamp instead.
        idx = jnp.clip(idx, 0, self.pool_size - 1)
        B = idx.shape[0]

        if self.use_prefix_tune_for_e_prompt:
            L, dual, P, length, H, Dh = self.prompt.shape
            raw_flat = gather_prompts_prefix(self._pool_pm, idx)  # (L, 2, B, length, H*Dh)
            # torch: raw (L,2,B,length,H,Dh) contiguous, then .reshape(L,B,2,length,H,Dh)
            # = flat reinterpretation (interleaves dual/batch when B != 2, NOT a
            # transpose). We reproduce that quirk exactly; free metadata reshape.
            batched_prompt = raw_flat.reshape(L, B, dual, length, H, Dh)
        else:
            L, P, dl, E = self.prompt.shape
            batched_prompt = gather_prompts_plain(self._pool_pm, idx)  # (L, B, 2*length, E)
            # torch reshape here is a no-op (same shape).
        out["batched_prompt"] = batched_prompt
        return out


# ----------------------------------------------------------------------------
# Reference (pure JAX) for correctness checking.
# ----------------------------------------------------------------------------
def _ref_forward_prefix(prompt, idx):
    raw = prompt[:, :, idx]  # (L, 2, B, length, H, Dh)
    L, dual, B, length, H, Dh = raw.shape
    return raw.reshape(L, B, dual, length, H, Dh)


def _ref_forward_plain(prompt, idx):
    raw = prompt[:, idx]  # (L, B, 2*length, E)
    L, B, dl, E = raw.shape
    return raw.reshape(L, B, dl, E)


def _assert_close(a, b, msg):
    # Explicit tolerances so the check stays valid if the dtype knob is bf16.
    assert jnp.allclose(
        a.astype(jnp.float32), b.astype(jnp.float32), rtol=1e-6, atol=1e-6
    ), msg


if __name__ == "__main__":
    key = jax.random.PRNGKey(0)
    k1, k2, k3 = jax.random.split(key, 3)

    # Small shapes consistent with the module; embed_dim=128 keeps the last
    # (lane) dim at a full 128.
    length = 5
    embed_dim = 128
    num_heads = 4
    pool_size = 4
    num_layers = 2
    batch = 3
    idx = jnp.array([1, 3, 0], dtype=jnp.int32)

    # --- prefix-tune branch ---
    mod_prefix = SEPromptJAX(
        k1,
        length=length,
        embed_dim=embed_dim,
        prompt_init="uniform",
        prompt_pool=True,
        pool_size=pool_size,
        num_layers=num_layers,
        use_prefix_tune_for_e_prompt=True,
        num_heads=num_heads,
        same_key_value=False,
    )
    out_prefix = jax.block_until_ready(mod_prefix.forward(idx)["batched_prompt"])
    ref_prefix = _ref_forward_prefix(mod_prefix.prompt, idx)
    assert out_prefix.shape == (
        num_layers, batch, 2, length, num_heads, embed_dim // num_heads
    )
    _assert_close(out_prefix, ref_prefix, "prefix-tune branch mismatch")

    # --- prefix-tune branch with same_key_value ---
    mod_skv = SEPromptJAX(
        k3,
        length=length,
        embed_dim=embed_dim,
        prompt_init="uniform",
        prompt_pool=True,
        pool_size=pool_size,
        num_layers=num_layers,
        use_prefix_tune_for_e_prompt=True,
        num_heads=num_heads,
        same_key_value=True,
    )
    out_skv = jax.block_until_ready(mod_skv.forward(idx)["batched_prompt"])
    ref_skv = _ref_forward_prefix(mod_skv.prompt, idx)
    _assert_close(out_skv, ref_skv, "same_key_value branch mismatch")

    # --- plain (no prefix-tune) branch ---
    mod_plain = SEPromptJAX(
        k2,
        length=length,
        embed_dim=embed_dim,
        prompt_init="uniform",
        prompt_pool=True,
        pool_size=pool_size,
        num_layers=num_layers,
        use_prefix_tune_for_e_prompt=False,
    )
    out_plain = jax.block_until_ready(mod_plain.forward(idx)["batched_prompt"])
    ref_plain = _ref_forward_plain(mod_plain.prompt, idx)
    assert out_plain.shape == (num_layers, batch, 2 * length, embed_dim)
    _assert_close(out_plain, ref_plain, "plain branch mismatch")

    print("KERNEL_OK")
</pallas_src>

<mosaic_0001>
module attributes {stable_mosaic.version = 11 : i64} {
  func.func @_gather_dma_prefix_kernel(%arg0: i32, %arg1: memref<3xi32, #tpu.memory_space<smem>>, %arg2: memref<4x2x2x5x128xf32, #tpu.memory_space<any>>, %arg3: memref<2x2x3x5x128xf32, #tpu.memory_space<any>>, %arg4: memref<3x!tpu.dma_semaphore, #tpu.memory_space<semaphore_mem>>) attributes {dimension_semantics = [#tpu.dimension_semantics<arbitrary>], iteration_bounds = array<i64: 1>, scalar_prefetch = 1 : i64, scratch_operands = 1 : i64, tpu.core_type = #tpu.core_type<tc>, window_params = [{}, {}]} {
    %c0 = arith.constant 0 : index
    %0 = memref.load %arg1[%c0] : memref<3xi32, #tpu.memory_space<smem>>
    %c0_i32 = arith.constant 0 : i32
    %c0_i32_0 = arith.constant 0 : i32
    %c0_i32_1 = arith.constant 0 : i32
    %c0_i32_2 = arith.constant 0 : i32
    %c0_i32_3 = arith.constant 0 : i32
    %c0_i32_4 = arith.constant 0 : i32
    %1 = tpu.memref_slice %arg2[%0, %c0_i32_1, %c0_i32_2, %c0_i32_3, %c0_i32_4] : memref<4x2x2x5x128xf32, #tpu.memory_space<any>> -> memref<1x2x2x5x128xf32, #tpu.memory_space<any>>
    %2 = tpu.memref_squeeze %1 : memref<1x2x2x5x128xf32, #tpu.memory_space<any>> -> memref<2x2x5x128xf32, #tpu.memory_space<any>>
    %c0_i32_5 = arith.constant 0 : i32
    %c0_i32_6 = arith.constant 0 : i32
    %c0_i32_7 = arith.constant 0 : i32
    %c0_i32_8 = arith.constant 0 : i32
    %3 = tpu.memref_slice %arg3[%c0_i32_5, %c0_i32_6, %c0_i32, %c0_i32_7, %c0_i32_8] : memref<2x2x3x5x128xf32, #tpu.memory_space<any>> -> memref<2x2x1x5x128xf32, #tpu.memory_space<any>>
    %4 = tpu.memref_squeeze %3 : memref<2x2x1x5x128xf32, #tpu.memory_space<any>> -> memref<2x2x5x128xf32, #tpu.memory_space<any>>
    %5 = tpu.memref_slice %arg4[%c0_i32_0] : memref<3x!tpu.dma_semaphore, #tpu.memory_space<semaphore_mem>> -> memref<1x!tpu.dma_semaphore, #tpu.memory_space<semaphore_mem>>
    %6 = tpu.memref_squeeze %5 : memref<1x!tpu.dma_semaphore, #tpu.memory_space<semaphore_mem>> -> memref<!tpu.dma_semaphore, #tpu.memory_space<semaphore_mem>>
    tpu.enqueue_dma source(%2 : memref<2x2x5x128xf32, #tpu.memory_space<any>>) target(%4 : memref<2x2x5x128xf32, #tpu.memory_space<any>>) target_semaphore(%6 : memref<!tpu.dma_semaphore, #tpu.memory_space<semaphore_mem>>)
    %c1 = arith.constant 1 : index
    %7 = memref.load %arg1[%c1] : memref<3xi32, #tpu.memory_space<smem>>
    %c1_i32 = arith.constant 1 : i32
    %c1_i32_9 = arith.constant 1 : i32
    %c0_i32_10 = arith.constant 0 : i32
    %c0_i32_11 = arith.constant 0 : i32
    %c0_i32_12 = arith.constant 0 : i32
    %c0_i32_13 = arith.constant 0 : i32
    %8 = tpu.memref_slice %arg2[%7, %c0_i32_10, %c0_i32_11, %c0_i32_12, %c0_i32_13] : memref<4x2x2x5x128xf32, #tpu.memory_space<any>> -> memref<1x2x2x5x128xf32, #tpu.memory_space<any>>
    %9 = tpu.memref_squeeze %8 : memref<1x2x2x5x128xf32, #tpu.memory_space<any>> -> memref<2x2x5x128xf32, #tpu.memory_space<any>>
    %c0_i32_14 = arith.constant 0 : i32
    %c0_i32_15 = arith.constant 0 : i32
    %c0_i32_16 = arith.constant 0 : i32
    %c0_i32_17 = arith.constant 0 : i32
    %10 = tpu.memref_slice %arg3[%c0_i32_14, %c0_i32_15, %c1_i32, %c0_i32_16, %c0_i32_17] : memref<2x2x3x5x128xf32, #tpu.memory_space<any>> -> memref<2x2x1x5x128xf32, #tpu.memory_space<any>>
    %11 = tpu.memref_squeeze %10 : memref<2x2x1x5x128xf32, #tpu.memory_space<any>> -> memref<2x2x5x128xf32, #tpu.memory_space<any>>
    %12 = tpu.memref_slice %arg4[%c1_i32_9] : memref<3x!tpu.dma_semaphore, #tpu.memory_space<semaphore_mem>> -> memref<1x!tpu.dma_semaphore, #tpu.memory_space<semaphore_mem>>
    %13 = tpu.memref_squeeze %12 : memref<1x!tpu.dma_semaphore, #tpu.memory_space<semaphore_mem>> -> memref<!tpu.dma_semaphore, #tpu.memory_space<semaphore_mem>>
    tpu.enqueue_dma source(%9 : memref<2x2x5x128xf32, #tpu.memory_space<any>>) target(%11 : memref<2x2x5x128xf32, #tpu.memory_space<any>>) target_semaphore(%13 : memref<!tpu.dma_semaphore, #tpu.memory_space<semaphore_mem>>)
    %c2 = arith.constant 2 : index
    %14 = memref.load %arg1[%c2] : memref<3xi32, #tpu.memory_space<smem>>
    %c2_i32 = arith.constant 2 : i32
    %c2_i32_18 = arith.constant 2 : i32
    %c0_i32_19 = arith.constant 0 : i32
    %c0_i32_20 = arith.constant 0 : i32
    %c0_i32_21 = arith.constant 0 : i32
    %c0_i32_22 = arith.constant 0 : i32
    %15 = tpu.memref_slice %arg2[%14, %c0_i32_19, %c0_i32_20, %c0_i32_21, %c0_i32_22] : memref<4x2x2x5x128xf32, #tpu.memory_space<any>> -> memref<1x2x2x5x128xf32, #tpu.memory_space<any>>
    %16 = tpu.memref_squeeze %15 : memref<1x2x2x5x128xf32, #tpu.memory_space<any>> -> memref<2x2x5x128xf32, #tpu.memory_space<any>>
    %c0_i32_23 = arith.constant 0 : i32
    %c0_i32_24 = arith.constant 0 : i32
    %c0_i32_25 = arith.constant 0 : i32
    %c0_i32_26 = arith.constant 0 : i32
    %17 = tpu.memref_slice %arg3[%c0_i32_23, %c0_i32_24, %c2_i32, %c0_i32_25, %c0_i32_26] : memref<2x2x3x5x128xf32, #tpu.memory_space<any>> -> memref<2x2x1x5x128xf32, #tpu.memory_space<any>>
    %18 = tpu.memref_squeeze %17 : memref<2x2x1x5x128xf32, #tpu.memory_space<any>> -> memref<2x2x5x128xf32, #tpu.memory_space<any>>
    %19 = tpu.memref_slice %arg4[%c2_i32_18] : memref<3x!tpu.dma_semaphore, #tpu.memory_space<semaphore_mem>> -> memref<1x!tpu.dma_semaphore, #tpu.memory_space<semaphore_mem>>
    %20 = tpu.memref_squeeze %19 : memref<1x!tpu.dma_semaphore, #tpu.memory_space<semaphore_mem>> -> memref<!tpu.dma_semaphore, #tpu.memory_space<semaphore_mem>>
    tpu.enqueue_dma source(%16 : memref<2x2x5x128xf32, #tpu.memory_space<any>>) target(%18 : memref<2x2x5x128xf32, #tpu.memory_space<any>>) target_semaphore(%20 : memref<!tpu.dma_semaphore, #tpu.memory_space<semaphore_mem>>)
    %c0_i32_27 = arith.constant 0 : i32
    %c0_i32_28 = arith.constant 0 : i32
    %c0_i32_29 = arith.constant 0 : i32
    %c0_i32_30 = arith.constant 0 : i32
    %c0_i32_31 = arith.constant 0 : i32
    %c0_i32_32 = arith.constant 0 : i32
    %21 = tpu.memref_slice %arg2[%0, %c0_i32_29, %c0_i32_30, %c0_i32_31, %c0_i32_32] : memref<4x2x2x5x128xf32, #tpu.memory_space<any>> -> memref<1x2x2x5x128xf32, #tpu.memory_space<any>>
    %22 = tpu.memref_squeeze %21 : memref<1x2x2x5x128xf32, #tpu.memory_space<any>> -> memref<2x2x5x128xf32, #tpu.memory_space<any>>
    %c0_i32_33 = arith.constant 0 : i32
    %c0_i32_34 = arith.constant 0 : i32
    %c0_i32_35 = arith.constant 0 : i32
    %c0_i32_36 = arith.constant 0 : i32
    %23 = tpu.memref_slice %arg3[%c0_i32_33, %c0_i32_34, %c0_i32_27, %c0_i32_35, %c0_i32_36] : memref<2x2x3x5x128xf32, #tpu.memory_space<any>> -> memref<2x2x1x5x128xf32, #tpu.memory_space<any>>
    %24 = tpu.memref_squeeze %23 : memref<2x2x1x5x128xf32, #tpu.memory_space<any>> -> memref<2x2x5x128xf32, #tpu.memory_space<any>>
    %25 = tpu.memref_slice %arg4[%c0_i32_28] : memref<3x!tpu.dma_semaphore, #tpu.memory_space<semaphore_mem>> -> memref<1x!tpu.dma_semaphore, #tpu.memory_space<semaphore_mem>>
    %26 = tpu.memref_squeeze %25 : memref<1x!tpu.dma_semaphore, #tpu.memory_space<semaphore_mem>> -> memref<!tpu.dma_semaphore, #tpu.memory_space<semaphore_mem>>
    tpu.wait_dma2 semaphore(%26 : memref<!tpu.dma_semaphore, #tpu.memory_space<semaphore_mem>>) src(%22 : memref<2x2x5x128xf32, #tpu.memory_space<any>>) dst(%24 : memref<2x2x5x128xf32, #tpu.memory_space<any>>)
    %c1_i32_37 = arith.constant 1 : i32
    %c1_i32_38 = arith.constant 1 : i32
    %c0_i32_39 = arith.constant 0 : i32
    %c0_i32_40 = arith.constant 0 : i32
    %c0_i32_41 = arith.constant 0 : i32
    %c0_i32_42 = arith.constant 0 : i32
    %27 = tpu.memref_slice %arg2[%7, %c0_i32_39, %c0_i32_40, %c0_i32_41, %c0_i32_42] : memref<4x2x2x5x128xf32, #tpu.memory_space<any>> -> memref<1x2x2x5x128xf32, #tpu.memory_space<any>>
    %28 = tpu.memref_squeeze %27 : memref<1x2x2x5x128xf32, #tpu.memory_space<any>> -> memref<2x2x5x128xf32, #tpu.memory_space<any>>
    %c0_i32_43 = arith.constant 0 : i32
    %c0_i32_44 = arith.constant 0 : i32
    %c0_i32_45 = arith.constant 0 : i32
    %c0_i32_46 = arith.constant 0 : i32
    %29 = tpu.memref_slice %arg3[%c0_i32_43, %c0_i32_44, %c1_i32_37, %c0_i32_45, %c0_i32_46] : memref<2x2x3x5x128xf32, #tpu.memory_space<any>> -> memref<2x2x1x5x128xf32, #tpu.memory_space<any>>
    %30 = tpu.memref_squeeze %29 : memref<2x2x1x5x128xf32, #tpu.memory_space<any>> -> memref<2x2x5x128xf32, #tpu.memory_space<any>>
    %31 = tpu.memref_slice %arg4[%c1_i32_38] : memref<3x!tpu.dma_semaphore, #tpu.memory_space<semaphore_mem>> -> memref<1x!tpu.dma_semaphore, #tpu.memory_space<semaphore_mem>>
    %32 = tpu.memref_squeeze %31 : memref<1x!tpu.dma_semaphore, #tpu.memory_space<semaphore_mem>> -> memref<!tpu.dma_semaphore, #tpu.memory_space<semaphore_mem>>
    tpu.wait_dma2 semaphore(%32 : memref<!tpu.dma_semaphore, #tpu.memory_space<semaphore_mem>>) src(%28 : memref<2x2x5x128xf32, #tpu.memory_space<any>>) dst(%30 : memref<2x2x5x128xf32, #tpu.memory_space<any>>)
    %c2_i32_47 = arith.constant 2 : i32
    %c2_i32_48 = arith.constant 2 : i32
    %c0_i32_49 = arith.constant 0 : i32
    %c0_i32_50 = arith.constant 0 : i32
    %c0_i32_51 = arith.constant 0 : i32
    %c0_i32_52 = arith.constant 0 : i32
    %33 = tpu.memref_slice %arg2[%14, %c0_i32_49, %c0_i32_50, %c0_i32_51, %c0_i32_52] : memref<4x2x2x5x128xf32, #tpu.memory_space<any>> -> memref<1x2x2x5x128xf32, #tpu.memory_space<any>>
    %34 = tpu.memref_squeeze %33 : memref<1x2x2x5x128xf32, #tpu.memory_space<any>> -> memref<2x2x5x128xf32, #tpu.memory_space<any>>
    %c0_i32_53 = arith.constant 0 : i32
    %c0_i32_54 = arith.constant 0 : i32
    %c0_i32_55 = arith.constant 0 : i32
    %c0_i32_56 = arith.constant 0 : i32
    %35 = tpu.memref_slice %arg3[%c0_i32_53, %c0_i32_54, %c2_i32_47, %c0_i32_55, %c0_i32_56] : memref<2x2x3x5x128xf32, #tpu.memory_space<any>> -> memref<2x2x1x5x128xf32, #tpu.memory_space<any>>
    %36 = tpu.memref_squeeze %35 : memref<2x2x1x5x128xf32, #tpu.memory_space<any>> -> memref<2x2x5x128xf32, #tpu.memory_space<any>>
    %37 = tpu.memref_slice %arg4[%c2_i32_48] : memref<3x!tpu.dma_semaphore, #tpu.memory_space<semaphore_mem>> -> memref<1x!tpu.dma_semaphore, #tpu.memory_space<semaphore_mem>>
    %38 = tpu.memref_squeeze %37 : memref<1x!tpu.dma_semaphore, #tpu.memory_space<semaphore_mem>> -> memref<!tpu.dma_semaphore, #tpu.memory_space<semaphore_mem>>
    tpu.wait_dma2 semaphore(%38 : memref<!tpu.dma_semaphore, #tpu.memory_space<semaphore_mem>>) src(%34 : memref<2x2x5x128xf32, #tpu.memory_space<any>>) dst(%36 : memref<2x2x5x128xf32, #tpu.memory_space<any>>)
    return
  }
}

</mosaic_0001>

<bundles_post_ra>
// kernel: tpu_custom_call.1
= control target key start
LH: loop header
LB: loop body
LE: loop exit
PB: predicated region body
PF: predicated region fallthrough
CT: control target
= control target key end

     0   :  { %s406_s0 = inlined_call_operand.vmem [shape: s32[3], index: 0, kind: input, shape index: {}]   ;;  %s407_s1 = inlined_call_operand.vmem [shape: f32[4,2,2,5,128], index: 1, kind: input, shape index: {}]   ;;  %s408_s2 = inlined_call_operand.vmem [shape: f32[2,2,3,5,128], index: 2, kind: output, shape index: {}]  }
   0x1   :  { %s7_s11 = sshll.u32 %s406_s0, 4  ;;  %s8_s11 = int_to_ptr.vmem [resolvable:$true] %s7_s11 }
   0x2   :  { %s322_s12 = scalar_lea.vmem %s8_s11, 16  ;;  %p327_p1 = scmp.lt.s32.totalorder %s8_s11, %s8_s11 }
   0x3   :  { %p323_p0 = scmp.ne.s32.totalorder %s8_s11, %s322_s12  ;;  %p328_p2 = scmp.lt.s32.totalorder %s322_s12, %s322_s12 }
   0x5   :  { %p329_p3 = por %p328_p2, %p327_p1 }
   0x7   :  { %p330_p4 = pnand %p329_p3, %p323_p0 }
   0x9   :  { %333 = shalt.err (!%p330_p4)  }
   0xa   :  { %s342_s13 = smov [#allocation4]  }
   0xb   :  { %10 = dma.vmem_to_smem %s8_s11, 16, %s342_s13, [#allocation3] }
   0xc   :  { %334 = dma.done.wait [#allocation3], 16 }
   0xd   :  { %335 = vsyncadd [#allocation3], 4294967280 }
   0xe   :  { %12 = sfence }
   0xf   :  { %s13_s14 = sld [smem:[#allocation4]] }
  0x15   :  { %s297_s15 = sshll.u32 %s13_s14, 5 }
  0x16   :  { %s15_s18 = scalar_lea.vmem %s407_s1, %s297_s15 }
  0x17   :  { %v33_v0 = vld [vmem:[%s15_s18] sm:$0x1f]  ;;  %v35_v1 = vld [vmem:[%s15_s18 + $0x8] sm:$0x1f]  ;;  %v37_v2 = vld [vmem:[%s15_s18 + $0x10] sm:$0x1f] }
  0x18   :  { %34 = vst [vmem:[%s408_s2] sm:$0x1f] %v33_v0  ;;  %36 = vst [vmem:[%s408_s2 + $0x18] sm:$0x1f] %v35_v1  ;;  %v39_v3 = vld [vmem:[%s15_s18 + $0x18] sm:$0x1f] }
  0x19   :  { %38 = vst [vmem:[%s408_s2 + $0x30] sm:$0x1f] %v37_v2  ;;  %40 = vst [vmem:[%s408_s2 + $0x48] sm:$0x1f] %v39_v3 }
  0x1a   :  { %79 = vsyncadd [#allocation2], 320  ;;  %s298_s26 = sld [smem:[#allocation4 + $0x1]] }
  0x20   :  { %s299_s27 = sshll.u32 %s298_s26, 5 }
  0x21   :  { %s82_s30 = scalar_lea.vmem %s407_s1, %s299_s27 }
  0x22   :  { %v102_v4 = vld [vmem:[%s82_s30] sm:$0x1f]  ;;  %v104_v5 = vld [vmem:[%s82_s30 + $0x8] sm:$0x1f]  ;;  %v106_v6 = vld [vmem:[%s82_s30 + $0x10] sm:$0x1f] }
  0x23   :  { %304 = vst [vmem:[%s408_s2 + $0x8] sm:$0x1f] %v102_v4  ;;  %305 = vst [vmem:[%s408_s2 + $0x20] sm:$0x1f] %v104_v5  ;;  %v108_v7 = vld [vmem:[%s82_s30 + $0x18] sm:$0x1f] }
  0x24   :  { %306 = vst [vmem:[%s408_s2 + $0x38] sm:$0x1f] %v106_v6  ;;  %307 = vst [vmem:[%s408_s2 + $0x50] sm:$0x1f] %v108_v7 }
  0x25   :  { %148 = vsyncadd [#allocation2 + $0x1], 320  ;;  %s308_s11 = sld [smem:[#allocation4 + $0x2]] }
  0x2b   :  { %s309_s12 = sshll.u32 %s308_s11, 5 }
  0x2c   :  { %s151_s15 = scalar_lea.vmem %s407_s1, %s309_s12 }
  0x2d   :  { %v171_v8 = vld [vmem:[%s151_s15] sm:$0x1f]  ;;  %v173_v9 = vld [vmem:[%s151_s15 + $0x8] sm:$0x1f]  ;;  %v175_v10 = vld [vmem:[%s151_s15 + $0x10] sm:$0x1f] }
  0x2e   :  { %314 = vst [vmem:[%s408_s2 + $0x10] sm:$0x1f] %v171_v8  ;;  %315 = vst [vmem:[%s408_s2 + $0x28] sm:$0x1f] %v173_v9  ;;  %v177_v11 = vld [vmem:[%s151_s15 + $0x18] sm:$0x1f] }
  0x2f   :  { %316 = vst [vmem:[%s408_s2 + $0x40] sm:$0x1f] %v175_v10  ;;  %317 = vst [vmem:[%s408_s2 + $0x58] sm:$0x1f] %v177_v11 }
  0x30   :  { %217 = vsyncadd [#allocation2 + $0x2], 320 }
  0x31   :  { %336 = dma.done.wait [#allocation2], 320 }
  0x32   :  { %337 = vsyncadd [#allocation2], 4294966976 }
  0x33   :  { %338 = dma.done.wait [#allocation2 + $0x1], 320 }
  0x34   :  { %339 = vsyncadd [#allocation2 + $0x1], 4294966976 }
  0x35   :  { %340 = dma.done.wait [#allocation2 + $0x2], 320 }
  0x36   :  { %341 = vsyncadd [#allocation2 + $0x2], 4294966976 }
  0x37   :  { %227 = vsyncmov [#allocation2] }
  0x3a   :  { %s228_s1 = vpop.sfrf %227 }
  0x3b   :  { %p318_p5 = scmp.ne.s32.totalorder %s228_s1, 0 }
  0x3d   :  { %232 = shalt.err (%p318_p5)  }
  0x3e   :  { %234 = vsyncmov [#allocation2 + $0x1] }
  0x41   :  { %s235_s23 = vpop.sfrf %234 }
  0x42   :  { %p319_p6 = scmp.ne.s32.totalorder %s235_s23, 0 }
  0x44   :  { %239 = shalt.err (%p319_p6)  }
  0x45   :  { %241 = vsyncmov [#allocation2 + $0x2] }
  0x48   :  { %s242_s24 = vpop.sfrf %241 }
  0x49   :  { %p320_p7 = scmp.ne.s32.totalorder %s242_s24, 0 }
  0x4b   :  { %246 = shalt.err (%p320_p7)  }

</bundles_post_ra>
